<compile_context>
chip_gen: v5e
topology: v5e:2x2
jax: 0.10.0
libtpu: 0.0.40
codegen_flags: <defaults>
</compile_context>

<pallas_src>
import jax
import jax.numpy as jnp
from jax import lax
from jax.experimental import pallas as pl
from jax.experimental.pallas import tpu as pltpu

_LANES = 128


def _make_mse_kernel(tb, C, R, steps, ragged):
    """Builds the sum-of-squared-differences kernel for one (tb, C) row block."""
    sub = tb // 8  # number of (8, C) sublane groups per block

    def kernel(x_ref, y_ref, o_ref, acc_ref):
        p = pl.program_id(0)   # row partition (parallel)
        k = pl.program_id(1)   # step within partition (reduction axis, last)

        @pl.when(k == 0)
        def _init():
            acc_ref[...] = jnp.zeros_like(acc_ref)

        def sum_sq(valid_rows=None):
            # Loads + casts + sub/mul stay on the VPU; the sublane-group reduce
            # keeps only an (8, C) accumulator live (no (tb, C) scratch RMW).
            d = x_ref[...].astype(jnp.float32) - y_ref[...].astype(jnp.float32)
            dd = d * d
            if valid_rows is not None:
                row = lax.broadcasted_iota(jnp.int32, (tb, C), 0)
                dd = jnp.where(row < valid_rows, dd, 0.0)
            return dd.reshape(sub, 8, C).sum(axis=0)

        if ragged:
            b = p * steps + k                      # global block index
            is_full = (b + 1) * tb <= R            # static R, traced b

            @pl.when(is_full)
            def _full():
                acc_ref[...] += sum_sq()

            @pl.when(jnp.logical_not(is_full))
            def _partial():
                # Rows beyond R in the edge block hold unspecified VMEM data;
                # mask them (OOB VMEM is NOT zero on TPU).
                acc_ref[...] += sum_sq(valid_rows=R - b * tb)
        else:
            acc_ref[...] += sum_sq()

        @pl.when(k == pl.num_programs(1) - 1)
        def _finalize():
            o_ref[...] = acc_ref[...]

    return kernel


def _xla_sum_sq(a, b):
    d = a.astype(jnp.float32).reshape(-1) - b.astype(jnp.float32).reshape(-1)
    return jnp.sum(d * d)


def pimse_loss(pis, pred_pis, reduction="mean", *, block_rows=4096,
               num_partitions=1, min_pallas_elements=65536,
               vmem_budget_bytes=12 * 1024 * 1024):
    """MSE loss between pis and pred_pis computed with a Pallas TPU kernel."""
    assert pis.shape == pred_pis.shape, "MSELoss requires matching shapes"
    out_dtype = jnp.promote_types(pis.dtype, pred_pis.dtype)

    if reduction == "none":
        # Purely elementwise; XLA's fused kernel is already optimal.  Keep the
        # input dtype like torch.nn.MSELoss(reduction='none').
        d = pis.astype(out_dtype) - pred_pis.astype(out_dtype)
        return d * d
    if reduction not in ("mean", "sum"):
        raise ValueError(f"unsupported reduction: {reduction}")

    total = pis.size
    if total == 0:
        # PyTorch: sum of empty -> 0, mean of empty -> nan.
        if reduction == "sum":
            return jnp.zeros((), out_dtype)
        return jnp.full((), jnp.nan, out_dtype)

    use_pallas = total >= min_pallas_elements
    if use_pallas:
        # Pick a copy-free 2-D (R, C) view of the flattened data.
        if total % _LANES == 0:
            R, C = total // _LANES, _LANES        # lane-dense flattened view
        else:
            C = pis.shape[-1]                      # natural trailing dim as lanes
            R = total // C
        c_pad = pl.cdiv(C, _LANES) * _LANES
        itemsize = max(jnp.dtype(pis.dtype).itemsize,
                       jnp.dtype(pred_pis.dtype).itemsize)
        # 2 inputs x 2 pipeline buffers must fit the scoped-VMEM budget
        # (<= 12 MiB keeps us under the 16 MiB v5e default with headroom).
        tb_cap = vmem_budget_bytes // (4 * c_pad * itemsize)
        tb = max(8, (min(block_rows, R, tb_cap) // 8) * 8)
        if R < 8 or 4 * tb * c_pad * itemsize > vmem_budget_bytes:
            use_pallas = False

    if not use_pallas:
        # Tiny / degenerate layouts: pallas launch overhead would dominate.
        s = _xla_sum_sq(pis, pred_pis)
    else:
        x = pis.reshape(R, C)        # metadata-only reshape, no HBM copy
        y = pred_pis.reshape(R, C)

        nblocks = pl.cdiv(R, tb)
        # Only split into partitions when it divides evenly (no fully-OOB blocks).
        parts = num_partitions if (num_partitions > 1
                                   and nblocks % num_partitions == 0) else 1
        steps = nblocks // parts
        ragged = (R % tb) != 0

        in_map = lambda p, k: (p * steps + k, 0)
        kernel = _make_mse_kernel(tb, C, R, steps, ragged)

        partials = pl.pallas_call(
            kernel,
            out_shape=jax.ShapeDtypeStruct((parts * 8, C), jnp.float32),
            grid_spec=pltpu.PrefetchScalarGridSpec(
                num_scalar_prefetch=0,
                grid=(parts, steps),
                in_specs=[
                    pl.BlockSpec((tb, C), in_map),
                    pl.BlockSpec((tb, C), in_map),
                ],
                out_specs=pl.BlockSpec((8, C), lambda p, k: (p, 0)),
                scratch_shapes=[pltpu.VMEM((8, C), jnp.float32)],
            ),
            compiler_params=pltpu.CompilerParams(
                dimension_semantics=("parallel", "arbitrary"),
            ),
            cost_estimate=pl.CostEstimate(
                flops=3 * total,
                transcendentals=0,
                bytes_accessed=int(x.nbytes) + int(y.nbytes) + parts * 8 * C * 4,
            ),
        )(x, y)
        s = jnp.sum(partials)

    if reduction == "mean":
        s = s / total
    return s.astype(out_dtype)


class PIMSELoss:
    """Mirror of the PyTorch module: forward(batch, model_out)."""

    def __init__(self, reduction="mean"):
        self.reduction = reduction

    def __call__(self, batch, model_out):
        return pimse_loss(batch["pis"], model_out["pred_pis"],
                          reduction=self.reduction)


if __name__ == "__main__":
    key = jax.random.PRNGKey(0)
    keys = jax.random.split(key, 8)

    def ref_mse(a, b, reduction="mean"):
        d = a.astype(jnp.float32) - b.astype(jnp.float32)
        s = jnp.sum(d * d)
        return s / a.size if reduction == "mean" else s

    # Case 1: module-shaped inputs (batch of policy vectors), lane-dense path,
    # single block.  Force the Pallas path (default threshold would fall back).
    pis = jax.random.uniform(keys[0], (8, 256), dtype=jnp.float32)
    pred = jax.random.uniform(keys[1], (8, 256), dtype=jnp.float32)
    out1 = jax.block_until_ready(pimse_loss(pis, pred, min_pallas_elements=0))
    assert jnp.allclose(out1, ref_mse(pis, pred), rtol=1e-6, atol=1e-6), out1

    # Module-style call (dict inputs, default threshold -> tiny-tensor XLA path).
    loss_mod = PIMSELoss(reduction="mean")
    out_mod = jax.block_until_ready(loss_mod({"pis": pis}, {"pred_pis": pred}))
    assert jnp.allclose(out_mod, ref_mse(pis, pred), rtol=1e-6, atol=1e-6), out_mod

    # Case 2: total % 128 == 0 but rows % block != 0 -> masked partial last
    # block + multi-step accumulation in the flattened lane-dense view, no pad.
    a2 = jax.random.normal(keys[2], (16, 1000), dtype=jnp.float32)
    b2 = jax.random.normal(keys[3], (16, 1000), dtype=jnp.float32)
    out2 = jax.block_until_ready(
        pimse_loss(a2, b2, block_rows=16, min_pallas_elements=0))
    assert jnp.allclose(out2, ref_mse(a2, b2), rtol=1e-5, atol=1e-6), out2

    # Case 3: total % 128 != 0 -> natural trailing dim (1001) as the lane dim,
    # 2 row partitions, ragged last block (4 valid of 8 rows), sum reduction.
    a3 = jax.random.normal(keys[4], (28, 1001), dtype=jnp.float32)
    b3 = jax.random.normal(keys[5], (28, 1001), dtype=jnp.float32)
    out3 = jax.block_until_ready(
        pimse_loss(a3, b3, reduction="sum", block_rows=8,
                   num_partitions=2, min_pallas_elements=0))
    assert jnp.allclose(out3, ref_mse(a3, b3, "sum"), rtol=1e-5, atol=1e-4), out3

    # Case 4: bf16 inputs streamed in native dtype, accumulated in f32.
    a4 = jax.random.normal(keys[6], (16, 1000), dtype=jnp.bfloat16)
    b4 = jax.random.normal(keys[7], (16, 1000), dtype=jnp.bfloat16)
    out4 = jax.block_until_ready(
        pimse_loss(a4, b4, block_rows=16, min_pallas_elements=0))
    assert jnp.allclose(out4.astype(jnp.float32), ref_mse(a4, b4),
                        rtol=2e-2, atol=1e-3), out4

    print("KERNEL_OK")
</pallas_src>

<mosaic_0001>
module attributes {stable_mosaic.version = 11 : i64} {
  func.func @kernel(%arg0: i32, %arg1: i32, %arg2: memref<16x128xf32, #tpu.memory_space<vmem>>, %arg3: memref<16x128xf32, #tpu.memory_space<vmem>>, %arg4: memref<8x128xf32, #tpu.memory_space<vmem>>, %arg5: memref<8x128xf32, #tpu.memory_space<vmem>>) attributes {dimension_semantics = [#tpu.dimension_semantics<parallel>, #tpu.dimension_semantics<arbitrary>], iteration_bounds = array<i64: 1, 1>, scalar_prefetch = 0 : i64, scratch_operands = 1 : i64, tpu.core_type = #tpu.core_type<tc>, window_params = [{transform_indices = @transform_0, window_bounds = array<i64: 16, 128>}, {transform_indices = @transform_1, window_bounds = array<i64: 16, 128>}, {transform_indices = @transform_2, window_bounds = array<i64: 8, 128>}]} {
    %c0_i32 = arith.constant 0 : i32
    %0 = arith.cmpi eq, %arg1, %c0_i32 : i32
    %1 = arith.extui %0 : i1 to i32
    %c0_i32_0 = arith.constant 0 : i32
    %2 = arith.cmpi ne, %1, %c0_i32_0 : i32
    scf.if %2 {
      %cst_10 = arith.constant 0.000000e+00 : f32
      %15 = vector.broadcast %cst_10 : f32 to vector<8x128xf32>
      %c0_11 = arith.constant 0 : index
      %c0_12 = arith.constant 0 : index
      %16 = vector.load %arg5[%c0_11, %c0_12] : memref<8x128xf32, #tpu.memory_space<vmem>>, vector<8x128xf32>
      tpu.vector_store %arg5[%c0_11, %c0_12], %15 {strides = array<i32>} : memref<8x128xf32, #tpu.memory_space<vmem>>, vector<8x128xf32>,
    } else {
    }
    %c0 = arith.constant 0 : index
    %c0_1 = arith.constant 0 : index
    %3 = vector.load %arg5[%c0, %c0_1] : memref<8x128xf32, #tpu.memory_space<vmem>>, vector<8x128xf32>
    %c0_2 = arith.constant 0 : index
    %c0_3 = arith.constant 0 : index
    %4 = vector.load %arg2[%c0_2, %c0_3] : memref<16x128xf32, #tpu.memory_space<vmem>>, vector<16x128xf32>
    %c0_4 = arith.constant 0 : index
    %c0_5 = arith.constant 0 : index
    %5 = vector.load %arg3[%c0_4, %c0_5] : memref<16x128xf32, #tpu.memory_space<vmem>>, vector<16x128xf32>
    %6 = arith.subf %4, %5 : vector<16x128xf32>
    %7 = arith.mulf %6, %6 : vector<16x128xf32>
    %8 = vector.shape_cast %7 : vector<16x128xf32> to vector<2x8x128xf32>
    %cst = arith.constant dense<0.000000e+00> : vector<8x128xf32>
    %9 = vector.multi_reduction <add>, %8, %cst [0] : vector<2x8x128xf32> to vector<8x128xf32>
    %10 = arith.addf %3, %9 : vector<8x128xf32>
    %c0_6 = arith.constant 0 : index
    %c0_7 = arith.constant 0 : index
    %11 = vector.load %arg5[%c0_6, %c0_7] : memref<8x128xf32, #tpu.memory_space<vmem>>, vector<8x128xf32>
    tpu.vector_store %arg5[%c0_6, %c0_7], %10 {strides = array<i32>} : memref<8x128xf32, #tpu.memory_space<vmem>>, vector<8x128xf32>,
    %c0_i32_8 = arith.constant 0 : i32
    %12 = arith.cmpi eq, %arg1, %c0_i32_8 : i32
    %13 = arith.extui %12 : i1 to i32
    %c0_i32_9 = arith.constant 0 : i32
    %14 = arith.cmpi ne, %13, %c0_i32_9 : i32
    scf.if %14 {
      %c0_10 = arith.constant 0 : index
      %c0_11 = arith.constant 0 : index
      %15 = vector.load %arg5[%c0_10, %c0_11] : memref<8x128xf32, #tpu.memory_space<vmem>>, vector<8x128xf32>
      %c0_12 = arith.constant 0 : index
      %c0_13 = arith.constant 0 : index
      %16 = vector.load %arg4[%c0_12, %c0_13] : memref<8x128xf32, #tpu.memory_space<vmem>>, vector<8x128xf32>
      tpu.vector_store %arg4[%c0_12, %c0_13], %15 {strides = array<i32>} : memref<8x128xf32, #tpu.memory_space<vmem>>, vector<8x128xf32>,
    } else {
    }
    return
  }
  func.func @transform_0(%arg0: i32, %arg1: i32) -> (i32, i32) {
    %c1_i32 = arith.constant 1 : i32
    %0 = arith.muli %arg0, %c1_i32 : i32
    %1 = arith.addi %0, %arg1 : i32
    %c0_i32 = arith.constant 0 : i32
    %c0_i32_0 = arith.constant 0 : i32
    return %1, %c0_i32 : i32, i32
  }
  func.func @transform_1(%arg0: i32, %arg1: i32) -> (i32, i32) {
    %c1_i32 = arith.constant 1 : i32
    %0 = arith.muli %arg0, %c1_i32 : i32
    %1 = arith.addi %0, %arg1 : i32
    %c0_i32 = arith.constant 0 : i32
    %c0_i32_0 = arith.constant 0 : i32
    return %1, %c0_i32 : i32, i32
  }
  func.func @transform_2(%arg0: i32, %arg1: i32) -> (i32, i32) {
    %c0_i32 = arith.constant 0 : i32
    %c0_i32_0 = arith.constant 0 : i32
    return %arg0, %c0_i32 : i32, i32
  }
}

</mosaic_0001>

<bundles_post_ra>
// kernel: tpu_custom_call.1
= control target key start
LH: loop header
LB: loop body
LE: loop exit
PB: predicated region body
PF: predicated region fallthrough
CT: control target
= control target key end

     0   :  { %7 = vsyncpa [#allocation4], 0  ;;  %s208_s0 = inlined_call_operand.hbm [shape: f32[16,128], index: 0, kind: input, shape index: {}]   ;;  %s209_s1 = inlined_call_operand.hbm [shape: f32[16,128], index: 1, kind: input, shape index: {}]   ;;  %s210_s2 = inlined_call_operand.hbm [shape: f32[8,128], index: 2, kind: output, shape index: {}]  }
   0x1   :  { %8 = vsyncpa [#allocation7], 0 }
   0x2   :  { %9 = vsyncpa [#allocation5], 0  ;;  %s18_s11 = sshll.u32 %s208_s0, 4  ;;  %s179_s12 = smov [#allocation3]   ;;  %s19_s11 = int_to_ptr.hbm [resolvable:$true] %s18_s11 }
   0x3   :  { %s20_s13 = sshll.u32 %s179_s12, 4  ;;  %s35_s16 = sshll.u32 %s209_s1, 4  ;;  %s21_s13 = int_to_ptr.vmem [resolvable:$true] %s20_s13  ;;  %s36_s16 = int_to_ptr.hbm [resolvable:$true] %s35_s16 }
   0x4   :  { %s180_s17 = smov 128   ;;  %s181_s18 = smov 8  }
   0x5   :  { %26 = dma.hbm_to_vmem [thread:$0]  %s19_s11, 256, %s21_s13, [#allocation4], %s180_s17, %s180_s17, %s181_s18  }
   0x6   :  { %s182_s19 = smov [#allocation6]  }
   0x7   :  { %s37_s20 = sshll.u32 %s182_s19, 4  ;;  %s38_s20 = int_to_ptr.vmem [resolvable:$true] %s37_s20 }
   0x8   :  { %43 = dma.hbm_to_vmem [thread:$0]  %s36_s16, 256, %s38_s20, [#allocation7], %s180_s17, %s180_s17, %s181_s18  }
   0x9   :  { %173 = dma.done.wait [#allocation4], 256  }
   0xa   :  { %174 = vsyncadd [#allocation4], 4294967040 }
   0xb   :  { %175 = dma.done.wait [#allocation7], 256  }
   0xc   :  { %176 = vsyncadd [#allocation7], 4294967040  ;;  %v62_v0 = vld [vmem:[#allocation3] sm:$0xff]  ;;  %v63_v1 = vld [vmem:[#allocation3 + $0x8] sm:$0xff]  ;;  %s183_s0 = smov [#allocation8]   ;;  %s85_s23 = sshll.u32 %s210_s2, 4  ;;  %s86_s23 = int_to_ptr.hbm [resolvable:$true] %s85_s23 }
   0xd   :  { %v64_v2 = vld [vmem:[#allocation6] sm:$0xff]  ;;  %v65_v3 = vld [vmem:[#allocation6 + $0x8] sm:$0xff]  ;;  %s83_s1 = sshll.u32 %s183_s0, 4  ;;  %s84_s1 = int_to_ptr.vmem [resolvable:$true] %s83_s1 }
   0xe   :  { %v66_v4 = vsub.f32 %v62_v0, %v64_v2  ;;  %v67_v5 = vsub.f32 %v63_v1, %v65_v3 }
  0x10   :  { %v68_v6 = vmul.f32 %v66_v4, %v66_v4  ;;  %v69_v7 = vmul.f32 %v67_v5, %v67_v5 }
  0x12   :  { %v70_v8 = vadd.f32 %v69_v7, %v68_v6 }
  0x14   :  { %77 = vst [vmem:[#allocation8] sm:$0xff] %v70_v8 }
  0x15   :  { %88 = dma.vmem_to_hbm [thread:$0]  %s84_s1, 128, %s86_s23, [#allocation5]  }
  0x16   :  { %177 = dma.done.wait [#allocation5], 128  }
  0x17   :  { %178 = vsyncadd [#allocation5], 4294967168 }
  0x18   :  { %93 = vsyncpa [#allocation4], 1 }
  0x19   :  { %94 = vsyncpa [#allocation7], 1 }
  0x1a   :  { %95 = vsyncpa [#allocation5], 1 }

</bundles_post_ra>
